<compile_context>
chip_gen: v5e
topology: v5e:2x2
jax: 0.10.0
libtpu: 0.0.40
codegen_flags: <defaults>
</compile_context>

<pallas_src>
import functools

import jax
import jax.numpy as jnp
import numpy as np
from jax import lax
from jax.experimental import pallas as pl
from jax.experimental.pallas import tpu as pltpu

# ------------- small config consistent with Decoder.__init__ -------------
OUTPUT_DIM  = 64          # vocab size
EMB_DIM     = 32
ENC_HID_DIM = 16          # bidirectional encoder -> enc_hid * 2 = 32
DEC_HID_DIM = 32
SRC_LEN     = 8
BATCH       = 2
ENC2        = 2 * ENC_HID_DIM          # 32
DECODE_T    = 4                        # decode steps for the fused-loop demo

# packed lane-dense per-step output layout: [pred | h_new | a | pad] -> width 128
PACK_W   = 128
PRED_OFF = 0
HID_OFF  = PRED_OFF + OUTPUT_DIM       # 64
A_OFF    = HID_OFF + DEC_HID_DIM       # 96

# ---- merged attention/embedding + GRU slab: [AG_ROWS, 128] ----
A_COLS = max(EMB_DIM, DEC_HID_DIM)     # 32 (A band occupies cols 0:32)
G_COLS = 3 * DEC_HID_DIM               # 96 (G band occupies cols 32:128)
assert A_COLS + G_COLS == 128

# A band (cols 0:A_COLS)
A_EMB   = 0                            # rows [0, 64)   : embedding table
A_WAH   = A_EMB + OUTPUT_DIM           # rows [64, 96)  : attn W (hidden part)
A_WAE   = A_WAH + DEC_HID_DIM          # rows [96, 128) : attn W (encoder part)
A_BA    = A_WAE + ENC2                 # row 128 (8-aligned) : attn bias, cols 0:32
A_V_ROW = A_BA                         # row 128, cols 32:64 : attn v
# G band (cols A_COLS:128), GRU input column order [embedded ; weighted]
G_WI = 0                               # rows [0, 64)
G_WH = G_WI + EMB_DIM + ENC2           # rows [64, 96)
G_BI = G_WH + DEC_HID_DIM              # row 96  (8-aligned)
G_BH = G_BI + 8                        # row 104 (8-aligned)
AG_ROWS = 136                          # >= max(A_BA+1, G_BH+1), multiple of 8

# ---- fc_out slab: [F_ROWS, 128] (weights in cols 0:64, rest zero) ----
F_W    = 0                             # rows [0, 96), row order [output; weighted; embedded]
F_B    = F_W + DEC_HID_DIM + ENC2 + EMB_DIM   # row 96 (8-aligned)
F_ROWS = 104                           # multiple of 8


def _idiv_const(x, c):
    if (c & (c - 1)) == 0:
        return jnp.right_shift(x, c.bit_length() - 1)
    return x // c


def _imod_const(x, c):
    if (c & (c - 1)) == 0:
        return jnp.bitwise_and(x, c - 1)
    return x % c


def _fused_decoder_kernel(ids_ref, h0_ref, enc_ref, ag_ref, f_ref, out_ref, h_scr,
                          *, batch, src_len):
    B, S = batch, src_len
    D, E, O = DEC_HID_DIM, EMB_DIM, OUTPUT_DIM
    t = pl.program_id(0)

    # hidden state lives in VMEM scratch across the whole decode loop
    @pl.when(t == 0)
    def _():
        h_scr[...] = h0_ref[...]

    h_all = h_scr[...]                                          # [B, D]
    enc   = enc_ref[...]                                        # [B*S, 2H]

    # ---- weights: static slices of the two VMEM-resident slabs ----
    emb_tab = ag_ref[A_EMB:A_EMB + O, 0:E]                      # [O, E]
    wa_h = ag_ref[A_WAH:A_WAH + D, 0:D]                         # [D, D]
    wa_e = ag_ref[A_WAE:A_WAE + ENC2, 0:D]                      # [2H, D]
    ba   = ag_ref[A_BA:A_BA + 1, 0:D]                           # [1, D]
    v    = ag_ref[A_V_ROW:A_V_ROW + 1, A_COLS:A_COLS + D]       # [1, D]
    wi   = ag_ref[G_WI:G_WI + E + ENC2, A_COLS:128]             # [E+2H, 3D]
    wh   = ag_ref[G_WH:G_WH + D, A_COLS:128]                    # [D, 3D]
    bi   = ag_ref[G_BI:G_BI + 1, A_COLS:128]                    # [1, 3D]
    bh   = ag_ref[G_BH:G_BH + 1, A_COLS:128]                    # [1, 3D]
    wf   = f_ref[F_W:F_W + D + ENC2 + E, :]                     # [D+2H+E, 128]
    bf   = f_ref[F_B:F_B + 1, :]                                # [1, 128]

    # ---- embedding gather as a one-hot matmul (dropout == identity, eval mode) ----
    row_b  = lax.broadcasted_iota(jnp.int32, (B, O), 0)
    lane_o = lax.broadcasted_iota(jnp.int32, (B, O), 1)
    id_mat = jnp.zeros((B, O), jnp.int32)
    for b in range(B):                                          # B=2, static unroll
        id_mat = id_mat + jnp.where(row_b == b, ids_ref[t * B + b], 0)
    onehot  = (lane_o == id_mat).astype(jnp.float32)            # [B, O]
    emb_all = jnp.dot(onehot, emb_tab, preferred_element_type=jnp.float32)   # [B, E]

    # ---- attention, fully batched (no per-batch loop, no concats) ----
    epart = jnp.dot(enc, wa_e, preferred_element_type=jnp.float32)           # [B*S, D]
    hp    = jnp.dot(h_all, wa_h, preferred_element_type=jnp.float32) + ba    # [B, D]
    # broadcast hp over the S positions of each batch with a 0/1 selector matmul
    sel_r  = lax.broadcasted_iota(jnp.int32, (B * S, B), 0)
    sel_c  = lax.broadcasted_iota(jnp.int32, (B * S, B), 1)
    sel_sb = (_idiv_const(sel_r, S) == sel_c).astype(jnp.float32)            # [B*S, B]
    hp_rep = jnp.dot(sel_sb, hp, preferred_element_type=jnp.float32)         # [B*S, D]
    energy = jnp.tanh(epart + hp_rep)                                        # [B*S, D]
    # one v . energy^T dot scores both batches at once
    sc_row = lax.dot_general(v, energy, (((1,), (1,)), ((), ())),
                             preferred_element_type=jnp.float32)             # [1, B*S]
    # segment softmax via a block-diagonal lane mask
    seg_r = lax.broadcasted_iota(jnp.int32, (B, B * S), 0)
    seg_c = lax.broadcasted_iota(jnp.int32, (B, B * S), 1)
    seg   = _idiv_const(seg_c, S) == seg_r                                   # [B, B*S]
    sc_m  = jnp.where(seg, sc_row, jnp.float32(-1e30))
    m     = jnp.max(sc_m, axis=-1, keepdims=True)
    p     = jnp.exp(sc_m - m)
    a_blk = p / jnp.sum(p, axis=-1, keepdims=True)                           # [B, B*S] block-diag
    weighted = jnp.dot(a_blk, enc, preferred_element_type=jnp.float32)       # [B, 2H]

    # ---- single GRU step, fused input matmul, gate order (r, z, n) ----
    x_cat = jnp.concatenate([emb_all, weighted], axis=-1)                    # [B, E+2H]
    gi = jnp.dot(x_cat, wi, preferred_element_type=jnp.float32) + bi         # [B, 3D]
    gh = jnp.dot(h_all, wh, preferred_element_type=jnp.float32) + bh         # [B, 3D]
    r = jax.nn.sigmoid(gi[:, 0 * D:1 * D] + gh[:, 0 * D:1 * D])
    z = jax.nn.sigmoid(gi[:, 1 * D:2 * D] + gh[:, 1 * D:2 * D])
    n = jnp.tanh(gi[:, 2 * D:3 * D] + r * gh[:, 2 * D:3 * D])
    h_new = (1.0 - z) * n + z * h_all                                        # [B, D]
    h_scr[...] = h_new                                                       # carry to next step

    # ---- fc_out on cat(output, weighted, embedded); weights lane-padded to 128 ----
    f_cat = jnp.concatenate([h_new, weighted, emb_all], axis=-1)             # [B, D+2H+E]
    pred_full = jnp.dot(f_cat, wf, preferred_element_type=jnp.float32) + bf  # [B, 128], cols>=64 are 0

    # ---- pack [pred | h_new | a | 0] with placement matmuls, one full-width store ----
    ph_r = lax.broadcasted_iota(jnp.int32, (D, PACK_W), 0)
    ph_c = lax.broadcasted_iota(jnp.int32, (D, PACK_W), 1)
    P_h  = (ph_c == ph_r + HID_OFF).astype(jnp.float32)                      # [D, 128]
    pa_r = lax.broadcasted_iota(jnp.int32, (B * S, PACK_W), 0)
    pa_c = lax.broadcasted_iota(jnp.int32, (B * S, PACK_W), 1)
    P_a  = (pa_c == A_OFF + _imod_const(pa_r, S)).astype(jnp.float32)        # [B*S, 128]
    out_ref[...] = (pred_full
                    + jnp.dot(h_new, P_h, preferred_element_type=jnp.float32)
                    + jnp.dot(a_blk, P_a, preferred_element_type=jnp.float32))


def _build_decode_call(T, B, S):
    grid_spec = pltpu.PrefetchScalarGridSpec(
        num_scalar_prefetch=1,                      # ids -> SMEM, available to every step
        grid=(T,),
        in_specs=[
            # constant block indices -> each buffer is DMA'd once and stays VMEM-resident
            pl.BlockSpec((B, DEC_HID_DIM), lambda t, ids: (0, 0)),   # initial hidden
            pl.BlockSpec((B * S, ENC2),    lambda t, ids: (0, 0)),   # encoder outputs (flat)
            pl.BlockSpec((AG_ROWS, 128),   lambda t, ids: (0, 0)),   # merged attn+emb+GRU slab
            pl.BlockSpec((F_ROWS, 128),    lambda t, ids: (0, 0)),   # fc_out slab
        ],
        out_specs=pl.BlockSpec((None, B, PACK_W), lambda t, ids: (t, 0, 0)),
        scratch_shapes=[pltpu.VMEM((B, DEC_HID_DIM), jnp.float32)],  # carried hidden state
    )
    kernel = functools.partial(_fused_decoder_kernel, batch=B, src_len=S)
    return pl.pallas_call(
        kernel,
        out_shape=jax.ShapeDtypeStruct((T, B, PACK_W), jnp.float32),
        grid_spec=grid_spec,
        compiler_params=pltpu.CompilerParams(dimension_semantics=("arbitrary",)),
    )


def init_params(key):
    ks = jax.random.split(key, 14)

    def u(k, shape, fan_in):
        bound = 1.0 / float(np.sqrt(fan_in))
        return jax.random.uniform(k, shape, jnp.float32, -bound, bound)

    p = {}
    p['embedding'] = jax.random.normal(ks[0], (OUTPUT_DIM, EMB_DIM), jnp.float32)
    # attention: Linear(enc2 + dec_hid -> dec_hid), v: Linear(dec_hid -> 1, no bias)
    fan_a = ENC2 + DEC_HID_DIM
    p['wa_h'] = u(ks[1], (DEC_HID_DIM, DEC_HID_DIM), fan_a)
    p['wa_e'] = u(ks[2], (ENC2, DEC_HID_DIM), fan_a)
    p['ba']   = u(ks[3], (1, DEC_HID_DIM), fan_a)
    p['v']    = u(ks[4], (1, DEC_HID_DIM), DEC_HID_DIM)
    # GRU(enc2 + emb -> dec_hid); input column order = [embedded ; weighted]
    fan_g = DEC_HID_DIM
    p['wi_e'] = u(ks[5], (EMB_DIM, 3 * DEC_HID_DIM), fan_g)
    p['wi_w'] = u(ks[6], (ENC2, 3 * DEC_HID_DIM), fan_g)
    p['wh']   = u(ks[7], (DEC_HID_DIM, 3 * DEC_HID_DIM), fan_g)
    p['bi']   = u(ks[8], (1, 3 * DEC_HID_DIM), fan_g)
    p['bh']   = u(ks[9], (1, 3 * DEC_HID_DIM), fan_g)
    # fc_out: Linear(dec_hid + enc2 + emb -> output_dim); row order = [output; weighted; embedded]
    fan_f = ENC2 + DEC_HID_DIM + EMB_DIM
    p['wf_h'] = u(ks[10], (DEC_HID_DIM, OUTPUT_DIM), fan_f)
    p['wf_w'] = u(ks[11], (ENC2, OUTPUT_DIM), fan_f)
    p['wf_e'] = u(ks[12], (EMB_DIM, OUTPUT_DIM), fan_f)
    p['bf']   = u(ks[13], (1, OUTPUT_DIM), fan_f)
    return p


def pack_params(p):
    """Pack all params ONCE into two lane-dense 128-wide slabs (outside the step path)."""
    assert EMB_DIM <= A_COLS and DEC_HID_DIM <= A_COLS
    slab_ag = jnp.zeros((AG_ROWS, 128), jnp.float32)
    slab_ag = slab_ag.at[A_EMB:A_EMB + OUTPUT_DIM, 0:EMB_DIM].set(p['embedding'])
    slab_ag = slab_ag.at[A_WAH:A_WAH + DEC_HID_DIM, 0:DEC_HID_DIM].set(p['wa_h'])
    slab_ag = slab_ag.at[A_WAE:A_WAE + ENC2, 0:DEC_HID_DIM].set(p['wa_e'])
    slab_ag = slab_ag.at[A_BA:A_BA + 1, 0:DEC_HID_DIM].set(p['ba'])
    slab_ag = slab_ag.at[A_V_ROW:A_V_ROW + 1, A_COLS:A_COLS + DEC_HID_DIM].set(p['v'])
    wi = jnp.concatenate([p['wi_e'], p['wi_w']], axis=0)          # [E+2H, 3D]
    slab_ag = slab_ag.at[G_WI:G_WI + EMB_DIM + ENC2, A_COLS:128].set(wi)
    slab_ag = slab_ag.at[G_WH:G_WH + DEC_HID_DIM, A_COLS:128].set(p['wh'])
    slab_ag = slab_ag.at[G_BI:G_BI + 1, A_COLS:128].set(p['bi'])
    slab_ag = slab_ag.at[G_BH:G_BH + 1, A_COLS:128].set(p['bh'])

    slab_f = jnp.zeros((F_ROWS, 128), jnp.float32)
    wf = jnp.concatenate([p['wf_h'], p['wf_w'], p['wf_e']], axis=0)   # [D+2H+E, O]
    slab_f = slab_f.at[F_W:F_W + DEC_HID_DIM + ENC2 + EMB_DIM, 0:OUTPUT_DIM].set(wf)
    slab_f = slab_f.at[F_B:F_B + 1, 0:OUTPUT_DIM].set(p['bf'])
    return {'slab_ag': slab_ag, 'slab_f': slab_f}


def decoder_decode(token_ids_TB, hidden, encoder_outputs, packed):
    """Fused multi-step decode: T decoder steps in ONE pallas_call (weights resident,
    hidden carried in VMEM). Returns per-step (preds [T,B,O], hiddens [T,B,D], attn [T,B,S])."""
    T, B = token_ids_TB.shape
    S = encoder_outputs.shape[0]
    enc_flat = jnp.transpose(encoder_outputs, (1, 0, 2)).reshape(B * S, ENC2)
    ids_flat = token_ids_TB.reshape(T * B).astype(jnp.int32)
    out = _build_decode_call(T, B, S)(ids_flat, hidden, enc_flat,
                                      packed['slab_ag'], packed['slab_f'])
    preds = out[:, :, PRED_OFF:PRED_OFF + OUTPUT_DIM]
    hids  = out[:, :, HID_OFF:HID_OFF + DEC_HID_DIM]
    attn  = out[:, :, A_OFF:A_OFF + S]
    return preds, hids, attn


def decoder_forward(input_ids, hidden, encoder_outputs, packed):
    """Single decoder step == the PyTorch module's forward (T = 1)."""
    preds, hids, attn = decoder_decode(input_ids[None, :], hidden, encoder_outputs, packed)
    # PyTorch module returns a AFTER unsqueeze(1): [batch, 1, src_len]
    return preds[0], hids[0], attn[0][:, None, :]


def reference_forward(input_ids, hidden, encoder_outputs, params):
    """Pure-JAX reference with identical math (for correctness check)."""
    D = DEC_HID_DIM
    emb = params['embedding'][input_ids]
    enc = jnp.transpose(encoder_outputs, (1, 0, 2))
    energy = jnp.tanh((hidden @ params['wa_h'])[:, None, :]
                      + jnp.einsum('bse,ed->bsd', enc, params['wa_e'])
                      + params['ba'][None, :, :])
    scores = jnp.sum(energy * params['v'][None, :, :], axis=-1)
    a = jax.nn.softmax(scores, axis=-1)
    weighted = jnp.einsum('bs,bse->be', a, enc)
    gi = emb @ params['wi_e'] + weighted @ params['wi_w'] + params['bi']
    gh = hidden @ params['wh'] + params['bh']
    r = jax.nn.sigmoid(gi[:, :D] + gh[:, :D])
    z = jax.nn.sigmoid(gi[:, D:2 * D] + gh[:, D:2 * D])
    n = jnp.tanh(gi[:, 2 * D:] + r * gh[:, 2 * D:])
    h_new = (1.0 - z) * n + z * hidden
    pred = (h_new @ params['wf_h'] + weighted @ params['wf_w']
            + emb @ params['wf_e'] + params['bf'])
    return pred, h_new, a[:, None, :]


def reference_decode(token_ids_TB, hidden, encoder_outputs, params):
    preds, hids, attns = [], [], []
    h = hidden
    for t in range(token_ids_TB.shape[0]):
        p_, h, a_ = reference_forward(token_ids_TB[t], h, encoder_outputs, params)
        preds.append(p_); hids.append(h); attns.append(a_[:, 0, :])
    return jnp.stack(preds), jnp.stack(hids), jnp.stack(attns)


if __name__ == "__main__":
    key = jax.random.PRNGKey(0)
    kp, ki, kh, ke = jax.random.split(key, 4)
    params = init_params(kp)
    packed = pack_params(params)

    hidden = jax.random.normal(kh, (BATCH, DEC_HID_DIM), jnp.float32)
    encoder_outputs = jax.random.normal(ke, (SRC_LEN, BATCH, ENC2), jnp.float32)
    token_ids = jax.random.randint(ki, (DECODE_T, BATCH), 0, OUTPUT_DIM, dtype=jnp.int32)

    # ---- single-step forward (the PyTorch module's semantics), T = 1 ----
    input_ids = token_ids[0]
    pred, h_new, a = decoder_forward(input_ids, hidden, encoder_outputs, packed)
    jax.block_until_ready((pred, h_new, a))

    pred_r, h_r, a_r = reference_forward(input_ids, hidden, encoder_outputs, params)
    np.testing.assert_allclose(np.asarray(pred), np.asarray(pred_r), rtol=1e-4, atol=1e-4)
    np.testing.assert_allclose(np.asarray(h_new), np.asarray(h_r), rtol=1e-4, atol=1e-4)
    np.testing.assert_allclose(np.asarray(a), np.asarray(a_r), rtol=1e-4, atol=1e-4)
    assert pred.shape == (BATCH, OUTPUT_DIM)
    assert h_new.shape == (BATCH, DEC_HID_DIM)
    assert a.shape == (BATCH, 1, SRC_LEN)

    # ---- fused T-step decode in one pallas_call (weights resident, h in VMEM) ----
    preds, hids, attns = decoder_decode(token_ids, hidden, encoder_outputs, packed)
    jax.block_until_ready((preds, hids, attns))
    preds_r, hids_r, attns_r = reference_decode(token_ids, hidden, encoder_outputs, params)
    np.testing.assert_allclose(np.asarray(preds), np.asarray(preds_r), rtol=5e-4, atol=5e-4)
    np.testing.assert_allclose(np.asarray(hids), np.asarray(hids_r), rtol=5e-4, atol=5e-4)
    np.testing.assert_allclose(np.asarray(attns), np.asarray(attns_r), rtol=5e-4, atol=5e-4)

    print("KERNEL_OK")
</pallas_src>

<mosaic_0001>
module attributes {stable_mosaic.version = 11 : i64} {
  func.func @_fused_decoder_kernel(%arg0: i32, %arg1: memref<2xi32, #tpu.memory_space<smem>>, %arg2: memref<2x32xf32, #tpu.memory_space<vmem>>, %arg3: memref<16x32xf32, #tpu.memory_space<vmem>>, %arg4: memref<136x128xf32, #tpu.memory_space<vmem>>, %arg5: memref<104x128xf32, #tpu.memory_space<vmem>>, %arg6: memref<1x2x128xf32, #tpu.memory_space<vmem>>, %arg7: memref<2x32xf32, #tpu.memory_space<vmem>>) attributes {dimension_semantics = [#tpu.dimension_semantics<arbitrary>], iteration_bounds = array<i64: 1>, scalar_prefetch = 1 : i64, scratch_operands = 1 : i64, tpu.core_type = #tpu.core_type<tc>, window_params = [{pipeline_mode = #tpu.pipeline_mode<synchronous>, transform_indices = @transform_0, window_bounds = array<i64: 2, 32>}, {pipeline_mode = #tpu.pipeline_mode<synchronous>, transform_indices = @transform_1, window_bounds = array<i64: 16, 32>}, {pipeline_mode = #tpu.pipeline_mode<synchronous>, transform_indices = @transform_2, window_bounds = array<i64: 136, 128>}, {pipeline_mode = #tpu.pipeline_mode<synchronous>, transform_indices = @transform_3, window_bounds = array<i64: 104, 128>}, {transform_indices = @transform_4, window_bounds = array<i64: 1, 2, 128>}]} {
    %c0_i32 = arith.constant 0 : i32
    %0 = arith.cmpi eq, %arg0, %c0_i32 : i32
    %1 = arith.extui %0 : i1 to i32
    %c0_i32_0 = arith.constant 0 : i32
    %2 = arith.cmpi ne, %1, %c0_i32_0 : i32
    scf.if %2 {
      %c0_50 = arith.constant 0 : index
      %c0_51 = arith.constant 0 : index
      %138 = vector.load %arg2[%c0_50, %c0_51] : memref<2x32xf32, #tpu.memory_space<vmem>>, vector<2x32xf32>
      %c0_52 = arith.constant 0 : index
      %c0_53 = arith.constant 0 : index
      %139 = vector.load %arg7[%c0_52, %c0_53] : memref<2x32xf32, #tpu.memory_space<vmem>>, vector<2x32xf32>
      tpu.vector_store %arg7[%c0_52, %c0_53], %138 {strides = array<i32>} : memref<2x32xf32, #tpu.memory_space<vmem>>, vector<2x32xf32>,
    } else {
    }
    %c0 = arith.constant 0 : index
    %c0_1 = arith.constant 0 : index
    %3 = vector.load %arg7[%c0, %c0_1] : memref<2x32xf32, #tpu.memory_space<vmem>>, vector<2x32xf32>
    %c0_2 = arith.constant 0 : index
    %c0_3 = arith.constant 0 : index
    %4 = vector.load %arg3[%c0_2, %c0_3] : memref<16x32xf32, #tpu.memory_space<vmem>>, vector<16x32xf32>
    %c0_4 = arith.constant 0 : index
    %c0_5 = arith.constant 0 : index
    %5 = vector.load %arg4[%c0_4, %c0_5] : memref<136x128xf32, #tpu.memory_space<vmem>>, vector<64x32xf32>
    %c64 = arith.constant 64 : index
    %c0_6 = arith.constant 0 : index
    %6 = vector.load %arg4[%c64, %c0_6] : memref<136x128xf32, #tpu.memory_space<vmem>>, vector<32x32xf32>
    %c96 = arith.constant 96 : index
    %c0_7 = arith.constant 0 : index
    %7 = vector.load %arg4[%c96, %c0_7] : memref<136x128xf32, #tpu.memory_space<vmem>>, vector<32x32xf32>
    %c128 = arith.constant 128 : index
    %c0_8 = arith.constant 0 : index
    %8 = vector.load %arg4[%c128, %c0_8] : memref<136x128xf32, #tpu.memory_space<vmem>>, vector<1x32xf32>
    %c128_9 = arith.constant 128 : index
    %c32 = arith.constant 32 : index
    %9 = vector.load %arg4[%c128_9, %c32] : memref<136x128xf32, #tpu.memory_space<vmem>>, vector<1x32xf32>
    %c0_10 = arith.constant 0 : index
    %c32_11 = arith.constant 32 : index
    %10 = vector.load %arg4[%c0_10, %c32_11] : memref<136x128xf32, #tpu.memory_space<vmem>>, vector<64x96xf32>
    %c64_12 = arith.constant 64 : index
    %c32_13 = arith.constant 32 : index
    %11 = vector.load %arg4[%c64_12, %c32_13] : memref<136x128xf32, #tpu.memory_space<vmem>>, vector<32x96xf32>
    %c96_14 = arith.constant 96 : index
    %c32_15 = arith.constant 32 : index
    %12 = vector.load %arg4[%c96_14, %c32_15] : memref<136x128xf32, #tpu.memory_space<vmem>>, vector<1x96xf32>
    %c104 = arith.constant 104 : index
    %c32_16 = arith.constant 32 : index
    %13 = vector.load %arg4[%c104, %c32_16] : memref<136x128xf32, #tpu.memory_space<vmem>>, vector<1x96xf32>
    %c0_17 = arith.constant 0 : index
    %c0_18 = arith.constant 0 : index
    %14 = vector.load %arg5[%c0_17, %c0_18] : memref<104x128xf32, #tpu.memory_space<vmem>>, vector<96x128xf32>
    %c96_19 = arith.constant 96 : index
    %c0_20 = arith.constant 0 : index
    %15 = vector.load %arg5[%c96_19, %c0_20] : memref<104x128xf32, #tpu.memory_space<vmem>>, vector<1x128xf32>
    %16 = tpu.iota {dimensions = array<i32: 0>} : vector<2x64xi32>
    %17 = tpu.iota {dimensions = array<i32: 1>} : vector<2x64xi32>
    %c0_i32_21 = arith.constant 0 : i32
    %18 = vector.broadcast %c0_i32_21 : i32 to vector<2x64xi32>
    %c0_i32_22 = arith.constant 0 : i32
    %19 = vector.broadcast %c0_i32_22 : i32 to vector<2x64xi32>
    %20 = arith.cmpi eq, %16, %19 : vector<2x64xi32>
    %c2_i32 = arith.constant 2 : i32
    %21 = arith.muli %arg0, %c2_i32 : i32
    %c0_i32_23 = arith.constant 0 : i32
    %22 = arith.addi %21, %c0_i32_23 : i32
    %23 = arith.index_cast %22 : i32 to index
    %24 = memref.load %arg1[%23] : memref<2xi32, #tpu.memory_space<smem>>
    %c0_i32_24 = arith.constant 0 : i32
    %25 = vector.broadcast %24 : i32 to vector<2x64xi32>
    %26 = vector.broadcast %c0_i32_24 : i32 to vector<2x64xi32>
    %27 = arith.select %20, %25, %26 : vector<2x64xi1>, vector<2x64xi32>
    %28 = arith.addi %18, %27 : vector<2x64xi32>
    %c1_i32 = arith.constant 1 : i32
    %29 = vector.broadcast %c1_i32 : i32 to vector<2x64xi32>
    %30 = arith.cmpi eq, %16, %29 : vector<2x64xi32>
    %c2_i32_25 = arith.constant 2 : i32
    %31 = arith.muli %arg0, %c2_i32_25 : i32
    %c1_i32_26 = arith.constant 1 : i32
    %32 = arith.addi %31, %c1_i32_26 : i32
    %33 = arith.index_cast %32 : i32 to index
    %34 = memref.load %arg1[%33] : memref<2xi32, #tpu.memory_space<smem>>
    %c0_i32_27 = arith.constant 0 : i32
    %35 = vector.broadcast %34 : i32 to vector<2x64xi32>
    %36 = vector.broadcast %c0_i32_27 : i32 to vector<2x64xi32>
    %37 = arith.select %30, %35, %36 : vector<2x64xi1>, vector<2x64xi32>
    %38 = arith.addi %28, %37 : vector<2x64xi32>
    %39 = arith.cmpi eq, %17, %38 : vector<2x64xi32>
    %40 = arith.extui %39 : vector<2x64xi1> to vector<2x64xi32>
    %41 = arith.sitofp %40 : vector<2x64xi32> to vector<2x64xf32>
    %cst = arith.constant dense<0.000000e+00> : vector<2x32xf32>
    %42 = tpu.matmul %41, %5, %cst {dimension_numbers = #tpu.dot_dimension_numbers<[1], [0], [0], [1], [0, 0, 1, 1], [], []>} : vector<2x64xf32>, vector<64x32xf32>, vector<2x32xf32> -> vector<2x32xf32>
    %cst_28 = arith.constant dense<0.000000e+00> : vector<16x32xf32>
    %43 = tpu.matmul %4, %7, %cst_28 {dimension_numbers = #tpu.dot_dimension_numbers<[1], [0], [0], [1], [0, 0, 1, 1], [], []>} : vector<16x32xf32>, vector<32x32xf32>, vector<16x32xf32> -> vector<16x32xf32>
    %cst_29 = arith.constant dense<0.000000e+00> : vector<2x32xf32>
    %44 = tpu.matmul %3, %6, %cst_29 {dimension_numbers = #tpu.dot_dimension_numbers<[1], [0], [0], [1], [0, 0, 1, 1], [], []>} : vector<2x32xf32>, vector<32x32xf32>, vector<2x32xf32> -> vector<2x32xf32>
    %45 = vector.broadcast %8 : vector<1x32xf32> to vector<2x32xf32>
    %46 = arith.addf %44, %45 : vector<2x32xf32>
    %47 = tpu.iota {dimensions = array<i32: 0>} : vector<16x2xi32>
    %48 = tpu.iota {dimensions = array<i32: 1>} : vector<16x2xi32>
    %c3_i32 = arith.constant 3 : i32
    %49 = vector.broadcast %c3_i32 : i32 to vector<16x2xi32>
    %50 = arith.shrsi %47, %49 : vector<16x2xi32>
    %51 = arith.cmpi eq, %50, %48 : vector<16x2xi32>
    %52 = arith.extui %51 : vector<16x2xi1> to vector<16x2xi32>
    %53 = arith.sitofp %52 : vector<16x2xi32> to vector<16x2xf32>
    %cst_30 = arith.constant dense<0.000000e+00> : vector<16x32xf32>
    %54 = tpu.matmul %53, %46, %cst_30 {dimension_numbers = #tpu.dot_dimension_numbers<[1], [0], [0], [1], [0, 0, 1, 1], [], []>} : vector<16x2xf32>, vector<2x32xf32>, vector<16x32xf32> -> vector<16x32xf32>
    %55 = arith.addf %43, %54 : vector<16x32xf32>
    %56 = math.tanh %55 : vector<16x32xf32>
    %cst_31 = arith.constant dense<0.000000e+00> : vector<1x16xf32>
    %57 = tpu.matmul %9, %56, %cst_31 {dimension_numbers = #tpu.dot_dimension_numbers<[1], [1], [0], [0], [0, 0, 1, 0], [], []>} : vector<1x32xf32>, vector<16x32xf32>, vector<1x16xf32> -> vector<1x16xf32>
    %58 = tpu.iota {dimensions = array<i32: 0>} : vector<2x16xi32>
    %59 = tpu.iota {dimensions = array<i32: 1>} : vector<2x16xi32>
    %c3_i32_32 = arith.constant 3 : i32
    %60 = vector.broadcast %c3_i32_32 : i32 to vector<2x16xi32>
    %61 = arith.shrsi %59, %60 : vector<2x16xi32>
    %62 = arith.cmpi eq, %61, %58 : vector<2x16xi32>
    %cst_33 = arith.constant -1.000000e+30 : f32
    %63 = vector.shape_cast %57 : vector<1x16xf32> to vector<1x16xf32>
    %64 = vector.broadcast %63 : vector<1x16xf32> to vector<2x16xf32>
    %65 = vector.broadcast %cst_33 : f32 to vector<2x16xf32>
    %66 = arith.select %62, %64, %65 : vector<2x16xi1>, vector<2x16xf32>
    %cst_34 = arith.constant dense<0xFF800000> : vector<2xf32>
    %67 = vector.multi_reduction <maximumf>, %66, %cst_34 [1] : vector<2x16xf32> to vector<2xf32>
    %68 = vector.shape_cast %67 : vector<2xf32> to vector<2x1xf32>
    %69 = vector.broadcast %68 : vector<2x1xf32> to vector<2x16xf32>
    %70 = arith.subf %66, %69 : vector<2x16xf32>
    %71 = math.exp %70 : vector<2x16xf32>
    %cst_35 = arith.constant dense<0.000000e+00> : vector<2xf32>
    %72 = vector.multi_reduction <add>, %71, %cst_35 [1] : vector<2x16xf32> to vector<2xf32>
    %73 = vector.shape_cast %72 : vector<2xf32> to vector<2x1xf32>
    %74 = vector.broadcast %73 : vector<2x1xf32> to vector<2x16xf32>
    %75 = arith.divf %71, %74 : vector<2x16xf32>
    %cst_36 = arith.constant dense<0.000000e+00> : vector<2x32xf32>
    %76 = tpu.matmul %75, %4, %cst_36 {dimension_numbers = #tpu.dot_dimension_numbers<[1], [0], [0], [1], [0, 0, 1, 1], [], []>} : vector<2x16xf32>, vector<16x32xf32>, vector<2x32xf32> -> vector<2x32xf32>
    %77 = tpu.concatenate %42, %76 in 1 : vector<2x32xf32>, vector<2x32xf32> -> vector<2x64xf32>
    %cst_37 = arith.constant dense<0.000000e+00> : vector<2x96xf32>
    %78 = tpu.matmul %77, %10, %cst_37 {dimension_numbers = #tpu.dot_dimension_numbers<[1], [0], [0], [1], [0, 0, 1, 1], [], []>} : vector<2x64xf32>, vector<64x96xf32>, vector<2x96xf32> -> vector<2x96xf32>
    %79 = vector.broadcast %12 : vector<1x96xf32> to vector<2x96xf32>
    %80 = arith.addf %78, %79 : vector<2x96xf32>
    %cst_38 = arith.constant dense<0.000000e+00> : vector<2x96xf32>
    %81 = tpu.matmul %3, %11, %cst_38 {dimension_numbers = #tpu.dot_dimension_numbers<[1], [0], [0], [1], [0, 0, 1, 1], [], []>} : vector<2x32xf32>, vector<32x96xf32>, vector<2x96xf32> -> vector<2x96xf32>
    %82 = vector.broadcast %13 : vector<1x96xf32> to vector<2x96xf32>
    %83 = arith.addf %81, %82 : vector<2x96xf32>
    %84 = vector.extract_strided_slice %80 {offsets = [0, 0], sizes = [2, 32], strides = [1, 1]} : vector<2x96xf32> to vector<2x32xf32>
    %85 = vector.extract_strided_slice %83 {offsets = [0, 0], sizes = [2, 32], strides = [1, 1]} : vector<2x96xf32> to vector<2x32xf32>
    %86 = arith.addf %84, %85 : vector<2x32xf32>
    %87 = arith.negf %86 : vector<2x32xf32>
    %88 = math.exp %87 : vector<2x32xf32>
    %cst_39 = arith.constant 1.000000e+00 : f32
    %89 = vector.broadcast %cst_39 : f32 to vector<2x32xf32>
    %90 = arith.addf %89, %88 : vector<2x32xf32>
    %91 = arith.divf %89, %90 : vector<2x32xf32>
    %92 = vector.extract_strided_slice %80 {offsets = [0, 32], sizes = [2, 32], strides = [1, 1]} : vector<2x96xf32> to vector<2x32xf32>
    %93 = vector.extract_strided_slice %83 {offsets = [0, 32], sizes = [2, 32], strides = [1, 1]} : vector<2x96xf32> to vector<2x32xf32>
    %94 = arith.addf %92, %93 : vector<2x32xf32>
    %95 = arith.negf %94 : vector<2x32xf32>
    %96 = math.exp %95 : vector<2x32xf32>
    %cst_40 = arith.constant 1.000000e+00 : f32
    %97 = vector.broadcast %cst_40 : f32 to vector<2x32xf32>
    %98 = arith.addf %97, %96 : vector<2x32xf32>
    %99 = arith.divf %97, %98 : vector<2x32xf32>
    %100 = vector.extract_strided_slice %80 {offsets = [0, 64], sizes = [2, 32], strides = [1, 1]} : vector<2x96xf32> to vector<2x32xf32>
    %101 = vector.extract_strided_slice %83 {offsets = [0, 64], sizes = [2, 32], strides = [1, 1]} : vector<2x96xf32> to vector<2x32xf32>
    %102 = arith.mulf %91, %101 : vector<2x32xf32>
    %103 = arith.addf %100, %102 : vector<2x32xf32>
    %104 = math.tanh %103 : vector<2x32xf32>
    %cst_41 = arith.constant 1.000000e+00 : f32
    %105 = vector.broadcast %cst_41 : f32 to vector<2x32xf32>
    %106 = arith.subf %105, %99 : vector<2x32xf32>
    %107 = arith.mulf %106, %104 : vector<2x32xf32>
    %108 = arith.mulf %99, %3 : vector<2x32xf32>
    %109 = arith.addf %107, %108 : vector<2x32xf32>
    %c0_42 = arith.constant 0 : index
    %c0_43 = arith.constant 0 : index
    %110 = vector.load %arg7[%c0_42, %c0_43] : memref<2x32xf32, #tpu.memory_space<vmem>>, vector<2x32xf32>
    tpu.vector_store %arg7[%c0_42, %c0_43], %109 {strides = array<i32>} : memref<2x32xf32, #tpu.memory_space<vmem>>, vector<2x32xf32>,
    %111 = tpu.concatenate %109, %76, %42 in 1 : vector<2x32xf32>, vector<2x32xf32>, vector<2x32xf32> -> vector<2x96xf32>
    %cst_44 = arith.constant dense<0.000000e+00> : vector<2x128xf32>
    %112 = tpu.matmul %111, %14, %cst_44 {dimension_numbers = #tpu.dot_dimension_numbers<[1], [0], [0], [1], [0, 0, 1, 1], [], []>} : vector<2x96xf32>, vector<96x128xf32>, vector<2x128xf32> -> vector<2x128xf32>
    %113 = vector.broadcast %15 : vector<1x128xf32> to vector<2x128xf32>
    %114 = arith.addf %112, %113 : vector<2x128xf32>
    %115 = tpu.iota {dimensions = array<i32: 0>} : vector<32x128xi32>
    %116 = tpu.iota {dimensions = array<i32: 1>} : vector<32x128xi32>
    %c64_i32 = arith.constant 64 : i32
    %117 = vector.broadcast %c64_i32 : i32 to vector<32x128xi32>
    %118 = arith.addi %115, %117 : vector<32x128xi32>
    %119 = arith.cmpi eq, %116, %118 : vector<32x128xi32>
    %120 = arith.extui %119 : vector<32x128xi1> to vector<32x128xi32>
    %121 = arith.sitofp %120 : vector<32x128xi32> to vector<32x128xf32>
    %122 = tpu.iota {dimensions = array<i32: 0>} : vector<16x128xi32>
    %123 = tpu.iota {dimensions = array<i32: 1>} : vector<16x128xi32>
    %c7_i32 = arith.constant 7 : i32
    %124 = vector.broadcast %c7_i32 : i32 to vector<16x128xi32>
    %125 = arith.andi %122, %124 : vector<16x128xi32>
    %c96_i32 = arith.constant 96 : i32
    %126 = vector.broadcast %c96_i32 : i32 to vector<16x128xi32>
    %127 = arith.addi %126, %125 : vector<16x128xi32>
    %128 = arith.cmpi eq, %123, %127 : vector<16x128xi32>
    %129 = arith.extui %128 : vector<16x128xi1> to vector<16x128xi32>
    %130 = arith.sitofp %129 : vector<16x128xi32> to vector<16x128xf32>
    %cst_45 = arith.constant dense<0.000000e+00> : vector<2x128xf32>
    %131 = tpu.matmul %109, %121, %cst_45 {dimension_numbers = #tpu.dot_dimension_numbers<[1], [0], [0], [1], [0, 0, 1, 1], [], []>} : vector<2x32xf32>, vector<32x128xf32>, vector<2x128xf32> -> vector<2x128xf32>
    %132 = arith.addf %114, %131 : vector<2x128xf32>
    %cst_46 = arith.constant dense<0.000000e+00> : vector<2x128xf32>
    %133 = tpu.matmul %75, %130, %cst_46 {dimension_numbers = #tpu.dot_dimension_numbers<[1], [0], [0], [1], [0, 0, 1, 1], [], []>} : vector<2x16xf32>, vector<16x128xf32>, vector<2x128xf32> -> vector<2x128xf32>
    %134 = arith.addf %132, %133 : vector<2x128xf32>
    %c0_47 = arith.constant 0 : index
    %c0_48 = arith.constant 0 : index
    %c0_49 = arith.constant 0 : index
    %135 = vector.load %arg6[%c0_47, %c0_48, %c0_49] : memref<1x2x128xf32, #tpu.memory_space<vmem>>, vector<1x2x128xf32>
    %136 = vector.shape_cast %135 : vector<1x2x128xf32> to vector<2x128xf32>
    %137 = vector.shape_cast %134 : vector<2x128xf32> to vector<1x2x128xf32>
    tpu.vector_store %arg6[%c0_47, %c0_48, %c0_49], %137 {strides = array<i32>} : memref<1x2x128xf32, #tpu.memory_space<vmem>>, vector<1x2x128xf32>,
    return
  }
  func.func @transform_0(%arg0: i32, %arg1: memref<2xi32, #tpu.memory_space<smem>>) -> (i32, i32) {
    %c0_i32 = arith.constant 0 : i32
    %c0_i32_0 = arith.constant 0 : i32
    %c0_i32_1 = arith.constant 0 : i32
    return %c0_i32, %c0_i32_0 : i32, i32
  }
  func.func @transform_1(%arg0: i32, %arg1: memref<2xi32, #tpu.memory_space<smem>>) -> (i32, i32) {
    %c0_i32 = arith.constant 0 : i32
    %c0_i32_0 = arith.constant 0 : i32
    %c0_i32_1 = arith.constant 0 : i32
    return %c0_i32, %c0_i32_0 : i32, i32
  }
  func.func @transform_2(%arg0: i32, %arg1: memref<2xi32, #tpu.memory_space<smem>>) -> (i32, i32) {
    %c0_i32 = arith.constant 0 : i32
    %c0_i32_0 = arith.constant 0 : i32
    %c0_i32_1 = arith.constant 0 : i32
    return %c0_i32, %c0_i32_0 : i32, i32
  }
  func.func @transform_3(%arg0: i32, %arg1: memref<2xi32, #tpu.memory_space<smem>>) -> (i32, i32) {
    %c0_i32 = arith.constant 0 : i32
    %c0_i32_0 = arith.constant 0 : i32
    %c0_i32_1 = arith.constant 0 : i32
    return %c0_i32, %c0_i32_0 : i32, i32
  }
  func.func @transform_4(%arg0: i32, %arg1: memref<2xi32, #tpu.memory_space<smem>>) -> (i32, i32, i32) {
    %c0_i32 = arith.constant 0 : i32
    %c0_i32_0 = arith.constant 0 : i32
    %c0_i32_1 = arith.constant 0 : i32
    return %arg0, %c0_i32, %c0_i32_0 : i32, i32, i32
  }
}

</mosaic_0001>

<bundles_post_ra>
// kernel: tpu_custom_call.1
= control target key start
LH: loop header
LB: loop body
LE: loop exit
PB: predicated region body
PF: predicated region fallthrough
CT: control target
= control target key end

     0   :  { %s868_s21 = smov [#allocation4]   ;;  %s1038_s0 = inlined_call_operand.hbm [shape: s32[2], index: 0, kind: input, shape index: {}]   ;;  %s1039_s1 = inlined_call_operand.hbm [shape: f32[2,32], index: 1, kind: input, shape index: {}]   ;;  %s1040_s2 = inlined_call_operand.hbm [shape: f32[16,32], index: 2, kind: input, shape index: {}]   ;;  %s1041_s3 = inlined_call_operand.hbm [shape: f32[136,128], index: 3, kind: input, shape index: {}]   ;;  %s1042_s4 = inlined_call_operand.hbm [shape: f32[104,128], index: 4, kind: input, shape index: {}]   ;;  %s1043_s5 = inlined_call_operand.hbm [shape: f32[1,2,128], index: 5, kind: output, shape index: {}]  }
   0x1   :  { %s11_s20 = sshll.u32 %s1038_s0, 4  ;;  %s12_s20 = int_to_ptr.hbm [resolvable:$true] %s11_s20 }
   0x2   :  { %14 = dma.hbm_to_smem %s12_s20, 16, %s868_s21, [#allocation3] }
   0x3   :  { %858 = dma.done.wait [#allocation3], 16 }
   0x4   :  { %859 = vsyncadd [#allocation3], 4294967280 }
   0x5   :  { %17 = sfence }
   0x6   :  { %18 = vsyncpa [#allocation6], 0 }
   0x7   :  { %19 = vsyncpa [#allocation9], 0 }
   0x8   :  { %20 = vsyncpa [#allocation12], 0  ;;  %s37_s24 = sshll.u32 %s1040_s2, 4  ;;  %s38_s24 = int_to_ptr.hbm [resolvable:$true] %s37_s24 }
   0x9   :  { %21 = vsyncpa [#allocation7], 0  ;;  %s869_s25 = smov [#allocation8]   ;;  %s27_s28 = sshll.u32 %s1039_s1, 4  ;;  %s28_s28 = int_to_ptr.hbm [resolvable:$true] %s27_s28 }
   0xa   :  { %s39_s26 = sshll.u32 %s869_s25, 4  ;;  %s870_s29 = smov 128   ;;  %s40_s26 = int_to_ptr.vmem [resolvable:$true] %s39_s26 }
   0xb   :  { %s871_s30 = smov 8   ;;  %s872_s6 = smov [#allocation5]  }
   0xc   :  { %45 = dma.hbm_to_vmem [thread:$0]  %s38_s24, 256, %s40_s26, [#allocation9], %s870_s29, %s870_s29, %s871_s30  }
   0xd   :  { %s29_s7 = sshll.u32 %s872_s6, 4  ;;  %s50_s10 = sshll.u32 %s1041_s3, 4  ;;  %s30_s7 = int_to_ptr.vmem [resolvable:$true] %s29_s7  ;;  %s51_s10 = int_to_ptr.hbm [resolvable:$true] %s50_s10 }
   0xe   :  { %32 = dma.hbm_to_vmem [thread:$0]  %s28_s28, 32, %s30_s7, [#allocation6]  }
   0xf   :  { %s63_s12 = sshll.u32 %s1042_s4, 4  ;;  %s873_s13 = smov [#allocation10]   ;;  %s64_s12 = int_to_ptr.hbm [resolvable:$true] %s63_s12 }
  0x10   :  { %s52_s14 = sshll.u32 %s873_s13, 4  ;;  %s874_s1 = smov [#allocation11]   ;;  %s53_s14 = int_to_ptr.vmem [resolvable:$true] %s52_s14 }
  0x11   :  { %58 = dma.hbm_to_vmem [thread:$0]  %s51_s10, 2176, %s53_s14, [#allocation9], %s870_s29, %s870_s29, %s871_s30  }
  0x12   :  { %s65_s15 = sshll.u32 %s874_s1, 4  ;;  %s66_s15 = int_to_ptr.vmem [resolvable:$true] %s65_s15 }
  0x13   :  { %71 = dma.hbm_to_vmem [thread:$0]  %s64_s12, 1664, %s66_s15, [#allocation12], %s870_s29, %s870_s29, %s871_s30  }
  0x14   :  { %860 = dma.done.wait [#allocation6], 32  }
  0x15   :  { %861 = vsyncadd [#allocation6], 4294967264 }
  0x16   :  { %862 = dma.done.wait [#allocation9], 2432  }
  0x17   :  { %863 = vsyncadd [#allocation9], 4294964864 }
  0x18   :  { %864 = dma.done.wait [#allocation12], 1664  }
  0x19   :  { %865 = vsyncadd [#allocation12], 4294965632  ;;  %v926_v0 = vld [vmem:[#allocation10 + $0x58] sm:$0xff]  ;;  %v928_v1 = vld [vmem:[#allocation10 + $0x50] sm:$0xff]  ;;  %vm93_vm0 = vcmask 254976   ;;  %vm173_vm1 = vcmask 261120   ;;  %v130_v13 = vlaneseq }
  0x1a   :  { %189 = vmatpush.msra.mxu3 %v926_v0  ;;  %v931_v2 = vld [vmem:[#allocation10 + $0x48] sm:$0xff]  ;;  %v935_v4 = vld [vmem:[#allocation10 + $0x40] sm:$0xff]  ;;  %v113_v5 = vld [vmem:[#allocation10 + $0x78] sm:$0xff]  ;;  %s875_s3 = smov 96   ;;  %vm213_vm3 = vcmask 1041408   ;;  %v876_v21 = vmov 0.0  }
  0x1b   :  { %v92_v3 = vld [vmem:[#allocation5] sm:$0x3]  ;;  %v112_v6 = vld [vmem:[#allocation10 + $0x70] sm:$0xff]  ;;  %v114_v8 = vld [vmem:[#allocation10 + $0x80] sm:$0x1]  ;;  %v946_v14 = vshrl.u32 %v130_v13, 7 }
  0x1c   :  { %190 = vmatpush.msra.mxu3 %v928_v1  ;;  %94 = vst.msk [vmem:[#allocation2] sm:$0x3] %vm93_vm0, %v92_v3  ;;  %272 = vrot.lane.b32.xlu0 %v114_v8, %s875_s3  ;;  %v111_v9 = vld [vmem:[#allocation10 + $0x68] sm:$0xff]  ;;  %v110_v10 = vld [vmem:[#allocation10 + $0x60] sm:$0xff]  ;;  %v96_v11 = vld [vmem:[#allocation8] sm:$0xff]  ;;  %v948_v15 = vand.u32 127, %v130_v13 }
  0x1d   :  { %v97_v12 = vld [vmem:[#allocation8 + $0x8] sm:$0xff]  ;;  %v198_v16 = vshra.s32 %v946_v14, 3  ;;  %v708_v17 = vld [vmem:[#allocation10 + $0x80] ss:$0 sm:$0xff]  ;;  %v953_v18 = vadd.s32 8, %v946_v14  ;;  %vm206_vm4 = vcmask 15360  }
  0x1e   :  { %191 = vmatpush.msra.mxu3 %v931_v2  ;;  %v302_v34 = vshra.s32 %v948_v15, 3  ;;  %vm306_vm7 = vcmask 123904   ;;  %v103_v39 = vld [vmem:[#allocation10 + $0x28] sm:$0xff]  ;;  %v102_v41 = vld [vmem:[#allocation10 + $0x20] sm:$0xff]  ;;  %v101_v43 = vld [vmem:[#allocation10 + $0x18] sm:$0xff]  ;;  %s136_s4 = sld [smem:[#allocation4]] }
  0x1f   :  { %vm200_vm2 = vcmp.eq.s32.totalorder %v198_v16, %v948_v15  ;;  %v199_v23 = vshra.s32 %v953_v18, 3  ;;  %v683_v40 = vpack.i.bf16 %v926_v0, %v103_v39  ;;  %v688_v42 = vpack.i.bf16 %v928_v1, %v102_v41  ;;  %v100_v46 = vld [vmem:[#allocation10 + $0x10] sm:$0xff]  ;;  %v105_v52 = vld [vmem:[#allocation10 + $0x38] sm:$0xff]  ;;  %s632_s16 = sld [smem:[#allocation4 + $0x1]]  ;;  %v99_v62 = vld [vmem:[#allocation10 + $0x8] sm:$0xff]  ;;  %s878_s17 = smov 32  }
  0x20   :  { %192 = vmatpush.msra.mxu3 %v935_v4  ;;  %v636_v22 = vsel %vm200_vm2, 1.0, %v876_v21  ;;  %vm303_vm6 = vcmp.eq.s32.totalorder %v302_v34, %v946_v14  ;;  %v693_v44 = vpack.i.bf16 %v931_v2, %v101_v43  ;;  %v698_v49 = vpack.i.bf16 %v935_v4, %v100_v46  ;;  %v104_v53 = vld [vmem:[#allocation10 + $0x30] sm:$0xff]  ;;  %160 = vmatpush.msra.mxu0 %v105_v52  ;;  %v98_v0 = vld [vmem:[#allocation10] sm:$0xff]  ;;  %s879_s18 = smov 64   ;;  %s880_s19 = smov [#allocation13]  }
  0x21   :  { %vm201_vm5 = vcmp.eq.s32.totalorder %v199_v23, %v948_v15  ;;  %684 = vrot.lane.b32.xlu2 %v683_v40, %s875_s3  ;;  %v678_v54 = vpack.i.bf16 %v104_v53, %v105_v52  ;;  %vm134_vm8 = vcmp.eq.s32.totalorder %v946_v14, 0  ;;  %vm139_vm9 = vcmp.eq.s32.totalorder %v946_v14, 1  ;;  %s618_s20 = sshll.u32 %s880_s19, 4  ;;  %s620_s23 = sshll.u32 %s1043_s5, 4  ;;  %s619_s20 = int_to_ptr.vmem [resolvable:$true] %s618_s20  ;;  %s621_s23 = int_to_ptr.hbm [resolvable:$true] %s620_s23 }
  0x22   :  { %258 = vmatpush.msrb.mxu3 %v113_v5  ;;  %v637_v24 = vsel %vm201_vm5, 1.0, %v876_v21  ;;  %161 = vmatpush.msra.mxu0 %v104_v53  ;;  %vm148_vm11 = vcmask 523264   ;;  %v559_v8 = vand.u32 7, %v953_v18 }
  0x23   :  { %v939_v7 = vld [vmem:[#allocation2] sm:$0x3] }
  0x24   :  { %259 = vmatpush.msrb.mxu3 %v112_v6  ;;  %162 = vmatpush.msra.mxu0 %v103_v39  ;;  %v137_v58 = vstv %s136_s4 }
  0x25   :  { %635 = vmatmul.msk.f32.vlgmr.msra.gmra.mxu3 %vm173_vm1, %v939_v7  ;;  %v142_v59 = vstv %s632_s16  ;;  %v138_v60 = vsel %vm134_vm8, %v137_v58, 0 }
  0x26   :  { %260 = vmatpush.msrb.mxu3 %v111_v9  ;;  %163 = vmatpush.msra.mxu0 %v102_v41  ;;  %v143_v61 = vsel %vm139_vm9, %v142_v59, 0  ;;  %v703_v9 = vpack.i.bf16 %v98_v0, %v99_v62 }
  0x27   :  { %v144_v63 = vadd.s32 %v143_v61, %v138_v60 }
  0x28   :  { %261 = vmatpush.msrb.mxu3 %v110_v10  ;;  %164 = vmatpush.msra.mxu0 %v101_v43  ;;  %v561_v10 = vadd.s32 96, %v559_v8  ;;  %v541_v8 = vadd.s32 24, %v946_v14 }
  0x29   :  { %689 = vrot.lane.b32.xlu2 %v688_v42, %s875_s3  ;;  %vm145_vm10 = vcmp.eq.s32.totalorder %v948_v15, %v144_v63 }
  0x2a   :  { %165 = vmatpush.msra.mxu0 %v100_v46  ;;  %v633_v1 = vsel %vm145_vm10, 1.0, %v876_v21  ;;  %vm563_vm12 = vcmp.eq.s32.totalorder %v948_v15, %v561_v10  ;;  %v126_v10 = vld [vmem:[#allocation11 + $0x48] sm:$0xff] }
  0x2c   :  { %166 = vmatpush.msra.mxu0 %v99_v62 }
  0x2d   :  { %641 = vmatmul.msk.f32.vlgmr.msrb.gmra.mxu3 %vm173_vm1, %v96_v11 }
  0x2e   :  { %167 = vmatpush.msra.mxu0 %v98_v0 }
  0x2f   :  { %634 = vmatmul.msk.f32.vlgmr.msra.gmra.mxu0 %vm148_vm11, %v633_v1 }
  0x31   :  { %694 = vrot.lane.b32.xlu2 %v693_v44, %s875_s3 }
  0x35   :  { %642 = vmatmul.msk.f32.gmra.mxu3 %vm173_vm1, %v97_v12 }
  0x39   :  { %699 = vrot.lane.b32.xlu2 %v698_v49, %s875_s3 }
  0x41   :  { %704 = vrot.lane.b32.xlu2 %v703_v9, %s875_s3  ;;  %v540_v9 = vadd.s32 16, %v946_v14 }
  0x7b   :  { %v978_v55 = vpop.permute.xlu2 %684 }
  0x7c   :  { %v687_v2 = vunpack.i.h.bf16 %v978_v55 }
  0x7e   :  { %453 = vmatpush.msrb.mxu0 %v687_v2 }
  0x83   :  { %v980_v56 = vpop.permute.xlu2 %689 }
  0x84   :  { %v692_v3 = vunpack.i.h.bf16 %v980_v56  ;;  %v691_v34 = vunpack.i.l.bf16 %v980_v56 }
  0x86   :  { %454 = vmatpush.msrb.mxu0 %v692_v3 }
  0x8b   :  { %v982_v57 = vpop.permute.xlu2 %694 }
  0x8c   :  { %v697_v4 = vunpack.i.h.bf16 %v982_v57 }
  0x8e   :  { %v273_v33 = vpop.permute.xlu0 %272  ;;  %455 = vmatpush.msrb.mxu0 %v697_v4 }
  0x93   :  { %v700_v5 = vpop.permute.xlu2 %699 }
  0x94   :  { %v702_v6 = vunpack.i.h.bf16 %v700_v5 }
  0x96   :  { %456 = vmatpush.msrb.mxu0 %v702_v6  ;;  %v127_v6 = vld [vmem:[#allocation11 + $0x50] sm:$0xff] }
  0x97   :  { %648 = vmatmul.msk.f32.vlgmr.msrb.gmra.mxu0 %vm173_vm1, %v939_v7 }
  0xa8   :  { %v194_v19 = vpop.f32.mrf.mxu3 }
  0xa9   :  { %v195_v20 = vadd.f32 %v708_v17, %v194_v19 }
  0xab   :  { %638 = vmatpush.msk.msra.mxu2 %vm213_vm3, %v195_v20 }
  0xac   :  { %639 = vmatmul.msk.f32.vlgmr.msra.gmra.mxu2 %vm206_vm4, %v636_v22  ;;  %v169_v41 = vpop.f32.mrf.mxu0 }
  0xad   :  { %349 = vmatpush.msrb.mxu2 %v97_v12  ;;  %v877_v12 = vmov 1.0  }
  0xae   :  { %662 = vmatpush.msk.msra.mxu0 %vm563_vm12, %v877_v12 }
  0xaf   :  { %350 = vmatpush.msrb.mxu2 %v96_v11  ;;  %v558_v11 = vand.u32 7, %v946_v14 }
  0xb0   :  { %v263_v25 = vpop.f32.mrf.mxu3 }
  0xb1   :  { %v560_v13 = vadd.s32 96, %v558_v11  ;;  %v545_v11 = vadd.s32 64, %v541_v8 }
  0xb3   :  { %vm562_vm13 = vcmp.eq.s32.totalorder %v948_v15, %v560_v13  ;;  %v544_v13 = vadd.s32 64, %v540_v9  ;;  %vm549_vm9 = vcmp.eq.s32.totalorder %v948_v15, %v545_v11 }
  0xb4   :  { %640 = vmatmul.msk.f32.gmra.mxu2 %vm206_vm4, %v637_v24  ;;  %663 = vmatpush.msk.msra.mxu0 %vm562_vm13, %v877_v12  ;;  %vm331_vm4 = vcmask 130048  }
  0xb5   :  { %vm548_vm10 = vcmp.eq.s32.totalorder %v948_v15, %v544_v13  ;;  %657 = vmatpush.msk.msra.mxu2 %vm549_vm9, %v877_v12 }
  0xb7   :  { %658 = vmatpush.msk.msra.mxu2 %vm548_vm10, %v877_v12 }
  0xb8   :  { %v266_v27 = vpop.f32.mrf.mxu3 }
 0x114   :  { %v458_v42 = vpop.f32.mrf.mxu0 }
 0x12f   :  { %v234_v26 = vpop.f32.mrf.mxu2 }
 0x130   :  { %v264_v30 = vadd.f32 %v263_v25, %v234_v26 }
 0x137   :  { %v237_v28 = vpop.f32.mrf.mxu2 }
 0x138   :  { %v267_v29 = vadd.f32 %v266_v27, %v237_v28 }
 0x13a   :  { %712 = vtanh.f32 %v267_v29  ;;  %v709_v29 = vld [vmem:[#allocation10 + $0x68] ss:$0 sm:$0xff] }
 0x13b   :  { %714 = vtanh.f32 %v264_v30  ;;  %438 = vrot.lane.b32.xlu2 %v709_v29, %s875_s3 }
 0x140   :  { %v713_v31 = vpop.eup %712 }
 0x141   :  { %643 = vmatpush.xpose.msk.msra.mxu1 %vm173_vm1, %v713_v31  ;;  %v715_v32 = vpop.eup %714 }
 0x145   :  { %644 = vmatpush.xpose.msk.msra.mxu1 %vm173_vm1, %v715_v32 }
 0x148   :  { %645 = vmatmul.msk.f32.vlgmr.msra.gmra.mxu1 %vm173_vm1, %v273_v33  ;;  %v686_v33 = vunpack.i.l.bf16 %v978_v55 }
 0x1c5   :  { %v299_v35 = vpop.f32.mrf.mxu1 }
 0x1c6   :  { %v304_v36 = vperm.slane %v299_v35, 0  ;;  %v696_v35 = vunpack.i.l.bf16 %v982_v57 }
 0x1c8   :  { %v305_v37 = vsel %vm303_vm6, %v304_v36, -1e+30  ;;  %v701_v36 = vunpack.i.l.bf16 %v700_v5  ;;  %v128_v5 = vld [vmem:[#allocation11 + $0x58] sm:$0xff] }
 0x1c9   :  { %v307_v38 = vsel %vm306_vm7, %v305_v37, -inf  ;;  %524 = vmatpush.msrb.mxu1 %v128_v5 }
 0x1ca   :  { %308 = vmax.xlane.f32.xlu0 %v307_v38 }
 0x1cb   :  { %525 = vmatpush.msrb.mxu1 %v127_v6 }
 0x1cd   :  { %526 = vmatpush.msrb.mxu1 %v126_v10 }
 0x23d   :  { %v309_v45 = vpop.xlane.xlu0 %308 }
 0x23e   :  { %v310_v47 = vsub.f32 %v305_v37, %v309_v45  ;;  %v705_v37 = vpop.permute.xlu2 %704  ;;  %v710_v45 = vld [vmem:[#allocation10 + $0x60] ss:$0 sm:$0xff] }
 0x23f   :  { %v706_v38 = vunpack.i.l.bf16 %v705_v37  ;;  %v707_v39 = vunpack.i.h.bf16 %v705_v37 }
 0x240   :  { %v311_v48 = vmul.f32 1.442695, %v310_v47 }
 0x242   :  { %716 = vpow2.f32 %v311_v48 }
 0x246   :  { %v439_v43 = vpop.permute.xlu2 %438 }
 0x247   :  { %v459_v44 = vadd.f32 %v458_v42, %v439_v43 }
 0x248   :  { %v973_v50 = vpop.eup %716 }
 0x249   :  { %v313_v51 = vsel %vm306_vm7, %v973_v50, 0.0  ;;  %482 = vrot.lane.b32.xlu2 %v459_v44, %s879_s18 }
 0x24a   :  { %314 = vadd.xlane.f32.xlu1 %v313_v51 }
 0x251   :  { %498 = vrot.lane.b32.xlu2 %v939_v7, %s878_s17 }
 0x259   :  { %510 = vrot.lane.b32.xlu2 %v169_v41, %s879_s18 }
 0x263   :  { %679 = vrot.lane.b32.xlu1 %v678_v54, %s875_s3 }
 0x2a3   :  { %v483_v63 = vpop.permute.xlu2 %482 }
 0x2bd   :  { %v315_v16 = vpop.xlane.xlu1 %314 }
 0x2be   :  { %718 = vrcp.f32 %v315_v16  ;;  %v327_v21 = vand.u32 2147483648, %v315_v16  ;;  %v325_v23 = vand.u32 2147483647, %v315_v16  ;;  %vm321_vm15 = vweird.f32 %v315_v16 }
 0x2c0   :  { %v328_v25 = vor.u32 1.1754944e-38, %v327_v21  ;;  %vm326_vm3 = vcmp.eq.f32.partialorder %v325_v23, 8.507059e+37  ;;  %v123_v21 = vld [vmem:[#allocation11 + $0x30] sm:$0xff] }
 0x2c1   :  { %v119_v23 = vld [vmem:[#allocation11 + $0x10] sm:$0xff] }
 0x2c4   :  { %v719_v17 = vpop.eup %718 }
 0x2c5   :  { %v317_v19 = vmul.f32 %v719_v17, %v315_v16  ;;  %vm322_vm14 = vweird.f32 %v719_v17  ;;  %v543_v16 = vadd.s32 64, %v953_v18  ;;  %v122_v18 = vld [vmem:[#allocation11 + $0x28] sm:$0xff] }
 0x2c6   :  { %vm323_vm2 = vmor %vm321_vm15, %vm322_vm14  ;;  %vm516_vm14 = vcmask 785408  }
 0x2c7   :  { %v318_v20 = vsub.f32 1.0, %v317_v19  ;;  %v542_v19 = vadd.s32 64, %v946_v14  ;;  %vm547_vm12 = vcmp.eq.s32.totalorder %v948_v15, %v543_v16  ;;  %v121_v14 = vld [vmem:[#allocation11 + $0x20] sm:$0xff] }
 0x2c8   :  { %659 = vmatpush.msk.msra.mxu2 %vm547_vm12, %v877_v12 }
 0x2c9   :  { %v319_v22 = vmul.f32 %v719_v17, %v318_v20  ;;  %v124_v20 = vld [vmem:[#allocation11 + $0x38] sm:$0xff]  ;;  %vm546_vm13 = vcmp.eq.s32.totalorder %v948_v15, %v542_v19 }
 0x2ca   :  { %660 = vmatpush.msk.msra.mxu2 %vm546_vm13, %v877_v12 }
 0x2cb   :  { %v320_v24 = vadd.f32 %v719_v17, %v319_v22  ;;  %v120_v22 = vld [vmem:[#allocation11 + $0x18] sm:$0xff] }
 0x2cd   :  { %v324_v26 = vsel %vm323_vm2, %v719_v17, %v320_v24  ;;  %v125_v17 = vld [vmem:[#allocation11 + $0x40] sm:$0xff]  ;;  %v118_v24 = vld [vmem:[#allocation11 + $0x8] sm:$0xff] }
 0x2ce   :  { %v329_v27 = vsel %vm326_vm3, %v328_v25, %v324_v26  ;;  %527 = vmatpush.msrb.mxu1 %v125_v17  ;;  %v499_v26 = vpop.permute.xlu2 %498 }
 0x2cf   :  { %v330_v28 = vmul.f32 %v973_v50, %v329_v27 }
 0x2d0   :  { %528 = vmatpush.msrb.mxu1 %v124_v20 }
 0x2d1   :  { %646 = vmatmul.msk.f32.vlgmr.msrb.gmra.mxu2 %vm331_vm4, %v330_v28  ;;  %664 = vmatmul.msk.f32.vlgmr.msra.gmra.mxu0 %vm331_vm4, %v330_v28 }
 0x2d2   :  { %529 = vmatpush.msrb.mxu1 %v123_v21 }
 0x2d4   :  { %530 = vmatpush.msrb.mxu1 %v122_v18 }
 0x2d5   :  { %v680_v30 = vpop.permute.xlu1 %679 }
 0x2d6   :  { %v682_v31 = vunpack.i.h.bf16 %v680_v30  ;;  %v681_v32 = vunpack.i.l.bf16 %v680_v30  ;;  %531 = vmatpush.msrb.mxu1 %v121_v14  ;;  %v117_v30 = vld [vmem:[#allocation11] sm:$0xff] }
 0x2d8   :  { %408 = vmatpush.msra.mxu3 %v681_v32  ;;  %532 = vmatpush.msrb.mxu1 %v120_v22 }
 0x2da   :  { %409 = vmatpush.msra.mxu3 %v682_v31  ;;  %533 = vmatpush.msrb.mxu1 %v119_v23  ;;  %v511_v31 = vpop.permute.xlu2 %510 }
 0x2dc   :  { %410 = vmatpush.msra.mxu3 %v686_v33  ;;  %534 = vmatpush.msrb.mxu1 %v118_v24 }
 0x2de   :  { %411 = vmatpush.msra.mxu3 %v691_v34  ;;  %535 = vmatpush.msrb.mxu1 %v117_v30  ;;  %v711_v34 = vld [vmem:[#allocation11 + $0x60] ss:$0 sm:$0xff] }
 0x2e0   :  { %412 = vmatpush.msra.mxu3 %v696_v35 }
 0x2e2   :  { %413 = vmatpush.msra.mxu3 %v701_v36 }
 0x2e4   :  { %414 = vmatpush.msra.mxu3 %v706_v38 }
 0x2e6   :  { %415 = vmatpush.msra.mxu3 %v707_v39 }
 0x34e   :  { %v608_v39 = vpop.f32.mrf.mxu0 }
 0x354   :  { %v352_v40 = vpop.f32.mrf.mxu2 }
 0x355   :  { %356 = vrot.lane.b32.xlu1 %v352_v40, %s878_s17 }
 0x35d   :  { %394 = vrot.lane.b32.xlu1 %v710_v45, %s875_s3 }
 0x3c7   :  { %v1010_v46 = vpop.permute.xlu1 %356 }
 0x3c8   :  { %v359_v47 = vsel %vm173_vm1, %v169_v41, %v1010_v46 }
 0x3c9   :  { %647 = vmatmul.msk.f32.vlgmr.msra.gmra.mxu3 %vm148_vm11, %v359_v47 }
 0x3cf   :  { %v395_v48 = vpop.permute.xlu1 %394 }
 0x44c   :  { %v417_v49 = vpop.f32.mrf.mxu3 }
 0x44d   :  { %v418_v50 = vadd.f32 %v417_v49, %v395_v48 }
 0x44f   :  { %v461_v51 = vadd.f32 %v459_v44, %v418_v50 }
 0x451   :  { %v649_v52 = vmul.f32 -1.442695, %v461_v51 }
 0x453   :  { %720 = vpow2.f32 %v649_v52 }
 0x459   :  { %v721_v53 = vpop.eup %720 }
 0x45a   :  { %v465_v7 = vadd.f32 1.0, %v721_v53 }
 0x45c   :  { %722 = vrcp.f32 %v465_v7  ;;  %v477_v57 = vand.u32 2147483648, %v465_v7  ;;  %v475_v59 = vand.u32 2147483647, %v465_v7  ;;  %vm471_vm6 = vweird.f32 %v465_v7 }
 0x45e   :  { %v478_v61 = vor.u32 1.1754944e-38, %v477_v57  ;;  %vm476_vm8 = vcmp.eq.f32.partialorder %v475_v59, 8.507059e+37 }
 0x462   :  { %v723_v54 = vpop.eup %722 }
 0x463   :  { %v467_v55 = vmul.f32 %v723_v54, %v465_v7  ;;  %vm472_vm5 = vweird.f32 %v723_v54 }
 0x464   :  { %vm473_vm7 = vmor %vm471_vm6, %vm472_vm5 }
 0x465   :  { %v468_v56 = vsub.f32 1.0, %v467_v55 }
 0x467   :  { %v469_v58 = vmul.f32 %v723_v54, %v468_v56 }
 0x469   :  { %v470_v60 = vadd.f32 %v723_v54, %v469_v58 }
 0x46b   :  { %v474_v62 = vsel %vm473_vm7, %v723_v54, %v470_v60 }
 0x46c   :  { %v479_v0 = vsel %vm476_vm8, %v478_v61, %v474_v62 }
 0x46d   :  { %v485_v1 = vmul.f32 %v483_v63, %v479_v0  ;;  %v492_v25 = vsub.f32 1.0, %v479_v0  ;;  %v501_v15 = vmul.f32 %v499_v26, %v479_v0 }
 0x46f   :  { %487 = vrot.lane.b32.xlu1 %v485_v1, %s879_s18 }
 0x4e1   :  { %v488_v2 = vpop.permute.xlu1 %487 }
 0x4e2   :  { %v490_v3 = vadd.f32 %v488_v2, %v418_v50 }
 0x4e4   :  { %724 = vtanh.f32 %v490_v3 }
 0x4ea   :  { %v725_v4 = vpop.eup %724 }
 0x4eb   :  { %494 = vrot.lane.b32.xlu0 %v725_v4, %s875_s3 }
 0x55d   :  { %v495_v27 = vpop.permute.xlu0 %494 }
 0x55e   :  { %v497_v28 = vmul.f32 %v495_v27, %v492_v25 }
 0x560   :  { %v502_v29 = vadd.f32 %v501_v15, %v497_v28 }
 0x562   :  { %504 = vrot.lane.b32.xlu1 %v502_v29, %s875_s3 }
 0x5d4   :  { %v505_v12 = vpop.permute.xlu1 %504 }
 0x5d5   :  { %508 = vst.msk [vmem:[#allocation2] sm:$0x3] %vm93_vm0, %v505_v12  ;;  %v513_v32 = vsel %vm173_vm1, %v505_v12, %v1010_v46  ;;  %661 = vmatmul.msk.f32.vlgmr.msra.gmra.mxu2 %vm173_vm1, %v505_v12 }
 0x5d6   :  { %v514_v33 = vsel %vm148_vm11, %v513_v32, %v511_v31 }
 0x5d7   :  { %650 = vmatmul.msk.f32.vlgmr.msrb.gmra.mxu1 %vm516_vm14, %v514_v33 }
 0x654   :  { %v537_v35 = vpop.f32.mrf.mxu1 }
 0x655   :  { %v538_v36 = vadd.f32 %v711_v34, %v537_v35 }
 0x658   :  { %v587_v37 = vpop.f32.mrf.mxu2 }
 0x659   :  { %v590_v38 = vadd.f32 %v587_v37, %v538_v36 }
 0x65b   :  { %v611_v40 = vadd.f32 %v608_v39, %v590_v38 }
 0x65d   :  { %612 = vst [vmem:[#allocation13] sm:$0x3] %v611_v40 }
 0x65e   :  { %623 = dma.vmem_to_hbm [thread:$0]  %s619_s20, 32, %s621_s23, [#allocation7]  }
 0x65f   :  { %866 = dma.done.wait [#allocation7], 32  }
 0x660   :  { %867 = vsyncadd [#allocation7], 4294967264 }
 0x661   :  { %628 = vsyncpa [#allocation6], 1 }
 0x662   :  { %629 = vsyncpa [#allocation9], 1 }
 0x663   :  { %630 = vsyncpa [#allocation12], 1 }
 0x664   :  { %631 = vsyncpa [#allocation7], 1 }

</bundles_post_ra>
